<compile_context>
chip_gen: v5e
topology: v5e:2x2
jax: 0.10.0
libtpu: 0.0.40
codegen_flags: <defaults>
</compile_context>

<pallas_src>
import functools

import jax
import jax.numpy as jnp
import numpy as np
from jax.experimental import pallas as pl
from jax.experimental.pallas import tpu as pltpu

EPS = 1e-15
_LANE = 128


def _round_up(v, m):
    return ((v + m - 1) // m) * m


def _vmem_capacity_bytes():
    try:
        cap = getattr(pltpu.get_tpu_info(), "vmem_capacity_bytes", None)
        if cap:
            return int(cap)
    except Exception:
        pass
    return 64 * 1024 * 1024          # conservative fallback (v7x per-TC VMEM)


def _make_kernel(block_b, n_pad, feat, k_pad, k_out, mm_dtype):
    """block_b batch elements per grid step; compute at Kp lanes, store K."""

    def kernel(x_ref, adj_ref, rm_ref, cx_ref, cadj_ref, nc_ref, cn_ref):
        # Cast MXU operands once at the matmul boundary; all VPU/EUP math and
        # all accumulation stay in f32 (v5e friendly).
        x_mm = x_ref[...].astype(mm_dtype)              # [bB, Np, F]
        adj_mm = adj_ref[...].astype(mm_dtype)          # [bB, Np, Np]
        rm_mm = rm_ref[...].astype(mm_dtype)            # [F,  Kp]

        # ---- assignment: one packed [bB*Np, F] @ [F, Kp] MXU pass ----
        s = jnp.dot(x_mm.reshape(block_b * n_pad, feat), rm_mm,
                    preferred_element_type=jnp.float32)         # [bB*Np, Kp]
        # mask is already folded into x in the wrapper (binary mask).
        s = jnp.maximum(s.reshape(block_b, n_pad, k_pad), 0.0)  # f32

        # ---- normalisations (VPU + EUP approximate reciprocal, f32) ----
        nc = s * pl.reciprocal(jnp.sum(s, axis=2, keepdims=True) + EPS,
                               approx=True)             # m_nc     [bB, Np, Kp]
        cn = s * pl.reciprocal(jnp.sum(s, axis=1, keepdims=True) + EPS,
                               approx=True)             # m_cn^T   [bB, Np, Kp]

        # store sliced to the real K -> 16x less nc/cn writeback bytes.
        nc_ref[...] = nc[:, :, :k_out].astype(nc_ref.dtype)
        cn_ref[...] = cn[:, :, :k_out].astype(cn_ref.dtype)

        nc_mm = nc.astype(mm_dtype)
        cn_mm = cn.astype(mm_dtype)

        # ---- pooled features / adjacency: batched MXU contractions over the
        # node axis (no explicit transposes; result layouts fall out directly).
        c_x = jnp.einsum('bnk,bnf->bkf', cn_mm, x_mm,
                         preferred_element_type=jnp.float32)     # [bB, Kp, F]
        tmp = jnp.einsum('bnk,bnm->bkm', cn_mm, adj_mm,
                         preferred_element_type=jnp.float32)     # [bB, Kp, Np]
        c_adj = jnp.einsum('bkm,bmj->bkj', tmp.astype(mm_dtype), nc_mm,
                           preferred_element_type=jnp.float32)   # [bB, Kp, Kp]

        # slice the 128-lane compute padding away at the store
        # (c_adj writeback shrinks 256x: [K,K] instead of [128,128]).
        cx_ref[...] = c_x[:, :k_out, :].astype(cx_ref.dtype)
        cadj_ref[...] = c_adj[:, :k_out, :k_out].astype(cadj_ref.dtype)

    return kernel


def inv_random_pool(x, adj, mask, rm, *, block_b=None,
                    matmul_dtype=jnp.bfloat16):
    """x: [B,N,F], adj: [B,N,N], mask: [B,N] (binary), rm: [F,K]."""
    B, N, F = x.shape
    K = rm.shape[1]
    out_dtype = x.dtype
    mm_dtype = jnp.dtype(matmul_dtype)

    Np = _round_up(N, 8)                  # sublane-aligned node axis
    Kp = _round_up(K, _LANE)              # lane-dense cluster axis for compute

    # Fold the binary node mask into x in the wrapper:
    #   relu((x*mask) @ rm) == relu(x @ rm) * mask   for a 0/1 mask, and m_cn
    # is identically zero on masked nodes, so c_x = m_cn @ x is unchanged.
    # This removes the mask DMA stream and the degenerate (bB,N,1) block.
    # NOTE: only valid for strictly binary masks (true for to_dense_x masks).
    x_in = x * mask[..., None].astype(x.dtype)

    # adj is 0/1 (small-integer) valued -> lossless in bf16; halves the
    # dominant HBM stream and feeds the MXU natively (no int path needed,
    # so this is also safe on v7x).
    if mm_dtype.itemsize < jnp.dtype(adj.dtype).itemsize:
        adj_in = adj.astype(mm_dtype)
    else:
        adj_in = adj

    rm_in = jnp.pad(rm, ((0, 0), (0, Kp - K)))

    if Np != N:
        x_in = jnp.pad(x_in, ((0, 0), (0, Np - N), (0, 0)))
        adj_in = jnp.pad(adj_in, ((0, 0), (0, Np - N), (0, Np - N)))

    # --- block_b heuristic: fill the MXU M dim (block_b*Np >= 256) but keep
    # >=4 grid steps when the batch allows it (v7x has 2 TensorCores and each
    # needs >=2 pipelined steps for DMA/compute overlap).
    if block_b is None:
        block_b = max(1, min(B, pl.cdiv(256, Np)))
        while block_b > 1 and pl.cdiv(B, block_b) < 4:
            block_b = max(1, block_b // 2)
    block_b = max(1, min(block_b, B))

    itz_x = jnp.dtype(x_in.dtype).itemsize
    itz_adj = jnp.dtype(adj_in.dtype).itemsize
    itz_rm = jnp.dtype(rm_in.dtype).itemsize
    itz_out = jnp.dtype(out_dtype).itemsize
    itz_mm = mm_dtype.itemsize

    def _vmem_bytes(bB):
        in_b = bB * (Np * F * itz_x + Np * Np * itz_adj) + F * Kp * itz_rm
        out_b = bB * (K * F + K * K + 2 * Np * K) * itz_out
        # f32 intermediates (s, nc, cn, tmp, c_x, c_adj) + mm-dtype casts.
        scr = bB * (3 * Np * Kp + Kp * Np + Kp * F + Kp * Kp) * 4
        scr += bB * (Np * F + Np * Np + 3 * Np * Kp) * itz_mm
        # inputs/outputs are double-buffered by the pipeline (no extra fudge).
        return 2 * in_b + 2 * out_b + scr

    # Generation-aware VMEM budget (64 MiB per TC on v7x, 128 MiB on v5e/v6e).
    vmem_cap = _vmem_capacity_bytes()
    while block_b > 1 and _vmem_bytes(block_b) > int(0.7 * vmem_cap):
        block_b = max(1, block_b // 2)
    vmem_limit = int(min(int(0.9 * vmem_cap),
                         max(_vmem_bytes(block_b) + (4 << 20), 16 << 20)))

    B_pad = pl.cdiv(B, block_b) * block_b
    if B_pad != B:
        pad = B_pad - B
        x_in = jnp.pad(x_in, ((0, pad), (0, 0), (0, 0)))
        adj_in = jnp.pad(adj_in, ((0, pad), (0, 0), (0, 0)))

    grid = (B_pad // block_b,)
    kernel = _make_kernel(block_b, Np, F, Kp, K, mm_dtype)

    out_shapes = (
        jax.ShapeDtypeStruct((B_pad, K, F), out_dtype),    # c_x
        jax.ShapeDtypeStruct((B_pad, K, K), out_dtype),    # c_adj
        jax.ShapeDtypeStruct((B_pad, Np, K), out_dtype),   # m_nc
        jax.ShapeDtypeStruct((B_pad, Np, K), out_dtype),   # m_cn^T
    )

    grid_spec = pltpu.PrefetchScalarGridSpec(
        num_scalar_prefetch=0,
        grid=grid,
        in_specs=[
            pl.BlockSpec((block_b, Np, F), lambda b: (b, 0, 0)),   # x (masked)
            # For very large N on v7x (64 MiB VMEM) adj should additionally be
            # chunked along its column axis with an extra 'arbitrary'
            # reduction grid axis; unnecessary at these sizes.  On v5e, if
            # xprof shows exposed adj DMA, add pipeline_mode=pl.Buffered(3).
            pl.BlockSpec((block_b, Np, Np), lambda b: (b, 0, 0)),  # adj
            pl.BlockSpec((F, Kp), lambda b: (0, 0)),               # rm (shared)
        ],
        out_specs=[
            pl.BlockSpec((block_b, K, F), lambda b: (b, 0, 0)),
            pl.BlockSpec((block_b, K, K), lambda b: (b, 0, 0)),
            pl.BlockSpec((block_b, Np, K), lambda b: (b, 0, 0)),
            pl.BlockSpec((block_b, Np, K), lambda b: (b, 0, 0)),
        ],
    )

    # Advisory cost estimate for XLA's scheduler.
    flops = int(2 * B_pad * Np * Kp * (2 * F + Np + Kp))
    transcendentals = int(B_pad * (Np + Kp))
    bytes_accessed = int(
        x_in.size * itz_x + adj_in.size * itz_adj + rm_in.size * itz_rm
        + B_pad * (K * F + K * K + 2 * Np * K) * itz_out)

    c_x_p, c_adj_p, nc_p, cn_p = pl.pallas_call(
        kernel,
        out_shape=out_shapes,
        grid_spec=grid_spec,
        compiler_params=pltpu.CompilerParams(
            dimension_semantics=("parallel",),
            vmem_limit_bytes=vmem_limit),
        cost_estimate=pl.CostEstimate(
            flops=flops,
            transcendentals=transcendentals,
            bytes_accessed=bytes_accessed),
    )(x_in, adj_in, rm_in)

    # Un-pad / re-orient (cheap XLA-side layout plumbing).
    c_x = c_x_p[:B]                                  # [B, K, F]
    c_adj = c_adj_p[:B]                              # [B, K, K]
    m_nc = nc_p[:B, :N]                              # [B, N, K]
    m_cn = jnp.swapaxes(cn_p[:B, :N], -1, -2)        # [B, K, N]

    # The torch module also returns x.new_zeros(1) as a (constant) loss.
    # NOTE: forward-only; x.detach() in the assignment path only changes
    # gradients, not forward values.
    loss = jnp.zeros((1,), dtype=out_dtype)
    return c_x, c_adj, m_nc, m_cn, loss


def _reference(x, adj, mask, rm):
    """Pure-JAX reference mirroring the PyTorch forward."""
    s = jnp.maximum(jnp.einsum('bnf,fk->bnk', x, rm), 0.0)
    s = s * mask[..., None]
    m_nc = s / (jnp.sum(s, axis=-1, keepdims=True) + EPS)
    st = jnp.swapaxes(s, -2, -1)
    m_cn = st / (jnp.sum(st, axis=-1, keepdims=True) + EPS)
    c_x = jnp.einsum('bkn,bnf->bkf', m_cn, x)
    c_adj = jnp.einsum('bkn,bnm,bmj->bkj', m_cn, adj, m_nc)
    return c_x, c_adj, m_nc, m_cn


if __name__ == "__main__":
    B, N, F, K = 8, 16, 32, 8   # batch, nodes, in_size, num_cluster
    key = jax.random.PRNGKey(0)
    kx, kadj, kmask, krm = jax.random.split(key, 4)

    x = jax.random.normal(kx, (B, N, F), dtype=jnp.float32)
    adj = (jax.random.uniform(kadj, (B, N, N)) > 0.5).astype(jnp.float32)
    adj = adj * (1.0 - jnp.eye(N, dtype=jnp.float32))   # no self loops
    mask = (jax.random.uniform(kmask, (B, N)) > 0.25).astype(jnp.float32)
    rm = jax.random.normal(krm, (F, K), dtype=jnp.float32)

    rc_x, rc_adj, rm_nc, rm_cn = _reference(x, adj, mask, rm)

    # --- correctness check with f32 MXU operands (tight-ish tolerance;
    # the slack covers the EUP approximate reciprocals + MXU f32 passes.
    # Genuine indexing/layout bugs produce O(0.1..1) errors.) ---
    fn_f32 = jax.jit(functools.partial(inv_random_pool,
                                       matmul_dtype=jnp.float32))
    c_x, c_adj, m_nc, m_cn, loss = jax.block_until_ready(fn_f32(x, adj, mask, rm))

    assert c_x.shape == (B, K, F) and c_adj.shape == (B, K, K)
    assert m_nc.shape == (B, N, K) and m_cn.shape == (B, K, N)
    assert loss.shape == (1,)

    tol = dict(rtol=1e-2, atol=1e-2)
    np.testing.assert_allclose(np.asarray(c_x), np.asarray(rc_x), **tol)
    np.testing.assert_allclose(np.asarray(c_adj), np.asarray(rc_adj), **tol)
    np.testing.assert_allclose(np.asarray(m_nc), np.asarray(rm_nc), **tol)
    np.testing.assert_allclose(np.asarray(m_cn), np.asarray(rm_cn), **tol)

    # --- production default (bf16 MXU operands, bf16 adj in HBM): run it and
    # sanity-check it; near-zero assignment rows make tight m_nc comparison
    # meaningless at bf16 precision, so only loose/finiteness checks here. ---
    fn_fast = jax.jit(inv_random_pool)
    f_c_x, f_c_adj, f_m_nc, f_m_cn, f_loss = jax.block_until_ready(
        fn_fast(x, adj, mask, rm))
    for a in (f_c_x, f_c_adj, f_m_nc, f_m_cn, f_loss):
        assert np.isfinite(np.asarray(a)).all()
    np.testing.assert_allclose(np.asarray(f_c_x), np.asarray(rc_x),
                               rtol=1e-1, atol=1e-1)
    np.testing.assert_allclose(np.asarray(f_m_cn), np.asarray(rm_cn),
                               rtol=1e-1, atol=1e-1)

    print("KERNEL_OK")
</pallas_src>

<mosaic_0001>
module attributes {stable_mosaic.version = 11 : i64} {
  func.func @kernel(%arg0: i32, %arg1: memref<2x16x32xf32, #tpu.memory_space<vmem>>, %arg2: memref<2x16x16xf32, #tpu.memory_space<vmem>>, %arg3: memref<32x128xf32, #tpu.memory_space<vmem>>, %arg4: memref<2x8x32xf32, #tpu.memory_space<vmem>>, %arg5: memref<2x8x8xf32, #tpu.memory_space<vmem>>, %arg6: memref<2x16x8xf32, #tpu.memory_space<vmem>>, %arg7: memref<2x16x8xf32, #tpu.memory_space<vmem>>) attributes {dimension_semantics = [#tpu.dimension_semantics<parallel>], iteration_bounds = array<i64: 4>, scalar_prefetch = 0 : i64, scratch_operands = 0 : i64, tpu.core_type = #tpu.core_type<tc>, window_params = [{transform_indices = @transform_0, window_bounds = array<i64: 2, 16, 32>}, {transform_indices = @transform_1, window_bounds = array<i64: 2, 16, 16>}, {pipeline_mode = #tpu.pipeline_mode<synchronous>, transform_indices = @transform_2, window_bounds = array<i64: 32, 128>}, {transform_indices = @transform_3, window_bounds = array<i64: 2, 8, 32>}, {transform_indices = @transform_4, window_bounds = array<i64: 2, 8, 8>}, {transform_indices = @transform_5, window_bounds = array<i64: 2, 16, 8>}, {transform_indices = @transform_6, window_bounds = array<i64: 2, 16, 8>}]} {
    %c0 = arith.constant 0 : index
    %c0_0 = arith.constant 0 : index
    %c0_1 = arith.constant 0 : index
    %0 = vector.load %arg1[%c0, %c0_0, %c0_1] : memref<2x16x32xf32, #tpu.memory_space<vmem>>, vector<2x16x32xf32>
    %c0_2 = arith.constant 0 : index
    %c0_3 = arith.constant 0 : index
    %c0_4 = arith.constant 0 : index
    %1 = vector.load %arg2[%c0_2, %c0_3, %c0_4] : memref<2x16x16xf32, #tpu.memory_space<vmem>>, vector<2x16x16xf32>
    %c0_5 = arith.constant 0 : index
    %c0_6 = arith.constant 0 : index
    %2 = vector.load %arg3[%c0_5, %c0_6] : memref<32x128xf32, #tpu.memory_space<vmem>>, vector<32x128xf32>
    %3 = vector.shape_cast %0 : vector<2x16x32xf32> to vector<32x32xf32>
    %cst = arith.constant dense<0.000000e+00> : vector<32x128xf32>
    %4 = tpu.matmul %3, %2, %cst {dimension_numbers = #tpu.dot_dimension_numbers<[1], [0], [0], [1], [0, 0, 1, 1], [], []>} : vector<32x32xf32>, vector<32x128xf32>, vector<32x128xf32> -> vector<32x128xf32>
    %5 = vector.shape_cast %4 : vector<32x128xf32> to vector<2x16x128xf32>
    %cst_7 = arith.constant 0.000000e+00 : f32
    %6 = vector.broadcast %cst_7 : f32 to vector<2x16x128xf32>
    %7 = arith.maximumf %5, %6 : vector<2x16x128xf32>
    %cst_8 = arith.constant dense<0.000000e+00> : vector<2x16xf32>
    %8 = vector.multi_reduction <add>, %7, %cst_8 [2] : vector<2x16x128xf32> to vector<2x16xf32>
    %9 = vector.shape_cast %8 : vector<2x16xf32> to vector<2x16x1xf32>
    %cst_9 = arith.constant 1.000000e-15 : f32
    %10 = vector.broadcast %cst_9 : f32 to vector<2x16x1xf32>
    %11 = arith.addf %9, %10 : vector<2x16x1xf32>
    %12 = tpu.reciprocal %11 {approx = true} : vector<2x16x1xf32> -> vector<2x16x1xf32>
    %13 = vector.broadcast %12 : vector<2x16x1xf32> to vector<2x16x128xf32>
    %14 = arith.mulf %7, %13 : vector<2x16x128xf32>
    %cst_10 = arith.constant dense<0.000000e+00> : vector<2x128xf32>
    %15 = vector.multi_reduction <add>, %7, %cst_10 [1] : vector<2x16x128xf32> to vector<2x128xf32>
    %16 = vector.shape_cast %15 : vector<2x128xf32> to vector<2x1x128xf32>
    %cst_11 = arith.constant 1.000000e-15 : f32
    %17 = vector.broadcast %cst_11 : f32 to vector<2x1x128xf32>
    %18 = arith.addf %16, %17 : vector<2x1x128xf32>
    %19 = tpu.reciprocal %18 {approx = true} : vector<2x1x128xf32> -> vector<2x1x128xf32>
    %20 = vector.broadcast %19 : vector<2x1x128xf32> to vector<2x16x128xf32>
    %21 = arith.mulf %7, %20 : vector<2x16x128xf32>
    %22 = vector.extract_strided_slice %14 {offsets = [0, 0, 0], sizes = [2, 16, 8], strides = [1, 1, 1]} : vector<2x16x128xf32> to vector<2x16x8xf32>
    %c0_12 = arith.constant 0 : index
    %c0_13 = arith.constant 0 : index
    %c0_14 = arith.constant 0 : index
    %23 = vector.load %arg6[%c0_12, %c0_13, %c0_14] : memref<2x16x8xf32, #tpu.memory_space<vmem>>, vector<2x16x8xf32>
    tpu.vector_store %arg6[%c0_12, %c0_13, %c0_14], %22 {strides = array<i32>} : memref<2x16x8xf32, #tpu.memory_space<vmem>>, vector<2x16x8xf32>,
    %24 = vector.extract_strided_slice %21 {offsets = [0, 0, 0], sizes = [2, 16, 8], strides = [1, 1, 1]} : vector<2x16x128xf32> to vector<2x16x8xf32>
    %c0_15 = arith.constant 0 : index
    %c0_16 = arith.constant 0 : index
    %c0_17 = arith.constant 0 : index
    %25 = vector.load %arg7[%c0_15, %c0_16, %c0_17] : memref<2x16x8xf32, #tpu.memory_space<vmem>>, vector<2x16x8xf32>
    tpu.vector_store %arg7[%c0_15, %c0_16, %c0_17], %24 {strides = array<i32>} : memref<2x16x8xf32, #tpu.memory_space<vmem>>, vector<2x16x8xf32>,
    "tpu.trace_start"() <{level = 10 : i32, message = "bnk,bnf->bkf"}> : () -> ()
    %cst_18 = arith.constant dense<0.000000e+00> : vector<2x128x32xf32>
    %26 = tpu.matmul %21, %0, %cst_18 {dimension_numbers = #tpu.dot_dimension_numbers<[1], [1], [2], [2], [0, 0, 0, 2, 1, 2], [0], [0]>} : vector<2x16x128xf32>, vector<2x16x32xf32>, vector<2x128x32xf32> -> vector<2x128x32xf32>
    "tpu.trace_stop"() : () -> ()
    "tpu.trace_start"() <{level = 10 : i32, message = "bnk,bnm->bkm"}> : () -> ()
    %cst_19 = arith.constant dense<0.000000e+00> : vector<2x128x16xf32>
    %27 = tpu.matmul %21, %1, %cst_19 {dimension_numbers = #tpu.dot_dimension_numbers<[1], [1], [2], [2], [0, 0, 0, 2, 1, 2], [0], [0]>} : vector<2x16x128xf32>, vector<2x16x16xf32>, vector<2x128x16xf32> -> vector<2x128x16xf32>
    "tpu.trace_stop"() : () -> ()
    "tpu.trace_start"() <{level = 10 : i32, message = "bkm,bmj->bkj"}> : () -> ()
    %cst_20 = arith.constant dense<0.000000e+00> : vector<2x128x128xf32>
    %28 = tpu.matmul %27, %14, %cst_20 {dimension_numbers = #tpu.dot_dimension_numbers<[2], [1], [1], [2], [0, 0, 0, 1, 1, 2], [0], [0]>} : vector<2x128x16xf32>, vector<2x16x128xf32>, vector<2x128x128xf32> -> vector<2x128x128xf32>
    "tpu.trace_stop"() : () -> ()
    %29 = vector.extract_strided_slice %26 {offsets = [0, 0, 0], sizes = [2, 8, 32], strides = [1, 1, 1]} : vector<2x128x32xf32> to vector<2x8x32xf32>
    %c0_21 = arith.constant 0 : index
    %c0_22 = arith.constant 0 : index
    %c0_23 = arith.constant 0 : index
    %30 = vector.load %arg4[%c0_21, %c0_22, %c0_23] : memref<2x8x32xf32, #tpu.memory_space<vmem>>, vector<2x8x32xf32>
    tpu.vector_store %arg4[%c0_21, %c0_22, %c0_23], %29 {strides = array<i32>} : memref<2x8x32xf32, #tpu.memory_space<vmem>>, vector<2x8x32xf32>,
    %31 = vector.extract_strided_slice %28 {offsets = [0, 0, 0], sizes = [2, 8, 8], strides = [1, 1, 1]} : vector<2x128x128xf32> to vector<2x8x8xf32>
    %c0_24 = arith.constant 0 : index
    %c0_25 = arith.constant 0 : index
    %c0_26 = arith.constant 0 : index
    %32 = vector.load %arg5[%c0_24, %c0_25, %c0_26] : memref<2x8x8xf32, #tpu.memory_space<vmem>>, vector<2x8x8xf32>
    tpu.vector_store %arg5[%c0_24, %c0_25, %c0_26], %31 {strides = array<i32>} : memref<2x8x8xf32, #tpu.memory_space<vmem>>, vector<2x8x8xf32>,
    return
  }
  func.func @transform_0(%arg0: i32) -> (i32, i32, i32) {
    %c0_i32 = arith.constant 0 : i32
    %c0_i32_0 = arith.constant 0 : i32
    %c0_i32_1 = arith.constant 0 : i32
    return %arg0, %c0_i32, %c0_i32_0 : i32, i32, i32
  }
  func.func @transform_1(%arg0: i32) -> (i32, i32, i32) {
    %c0_i32 = arith.constant 0 : i32
    %c0_i32_0 = arith.constant 0 : i32
    %c0_i32_1 = arith.constant 0 : i32
    return %arg0, %c0_i32, %c0_i32_0 : i32, i32, i32
  }
  func.func @transform_2(%arg0: i32) -> (i32, i32) {
    %c0_i32 = arith.constant 0 : i32
    %c0_i32_0 = arith.constant 0 : i32
    %c0_i32_1 = arith.constant 0 : i32
    return %c0_i32, %c0_i32_0 : i32, i32
  }
  func.func @transform_3(%arg0: i32) -> (i32, i32, i32) {
    %c0_i32 = arith.constant 0 : i32
    %c0_i32_0 = arith.constant 0 : i32
    %c0_i32_1 = arith.constant 0 : i32
    return %arg0, %c0_i32, %c0_i32_0 : i32, i32, i32
  }
  func.func @transform_4(%arg0: i32) -> (i32, i32, i32) {
    %c0_i32 = arith.constant 0 : i32
    %c0_i32_0 = arith.constant 0 : i32
    %c0_i32_1 = arith.constant 0 : i32
    return %arg0, %c0_i32, %c0_i32_0 : i32, i32, i32
  }
  func.func @transform_5(%arg0: i32) -> (i32, i32, i32) {
    %c0_i32 = arith.constant 0 : i32
    %c0_i32_0 = arith.constant 0 : i32
    %c0_i32_1 = arith.constant 0 : i32
    return %arg0, %c0_i32, %c0_i32_0 : i32, i32, i32
  }
  func.func @transform_6(%arg0: i32) -> (i32, i32, i32) {
    %c0_i32 = arith.constant 0 : i32
    %c0_i32_0 = arith.constant 0 : i32
    %c0_i32_1 = arith.constant 0 : i32
    return %arg0, %c0_i32, %c0_i32_0 : i32, i32, i32
  }
}

</mosaic_0001>

<bundles_post_ra>
// kernel: inv_random_pool.1
= control target key start
LH: loop header
LB: loop body
LE: loop exit
PB: predicated region body
PF: predicated region fallthrough
CT: control target
= control target key end

     0   :  { %s1917_s0 = inlined_call_operand.vmem [shape: f32[8,16,32], index: 0, kind: input, shape index: {}]   ;;  %s1918_s1 = inlined_call_operand.vmem [shape: f32[8,16,16], index: 1, kind: input, shape index: {}]   ;;  %s1919_s2 = inlined_call_operand.vmem [shape: f32[32,128], index: 2, kind: input, shape index: {}]   ;;  %s1920_s3 = inlined_call_operand.hbm [shape: f32[8,8,32], index: 3, kind: output, shape index: {0}]   ;;  %s1921_s4 = inlined_call_operand.hbm [shape: f32[8,8,8], index: 4, kind: output, shape index: {1}]   ;;  %s1922_s5 = inlined_call_operand.vmem [shape: f32[8,16,8], index: 5, kind: output, shape index: {2}]   ;;  %s1923_s6 = inlined_call_operand.vmem [shape: f32[8,16,8], index: 6, kind: output, shape index: {3}]  }
   0x1   :  { %1924 = sst [smem:[#allocation8_spill]] %s1917_s0 }
   0x2   :  { %12 = vsyncpa [#allocation3], 0 }
   0x3   :  { %14 = vsyncpa [#allocation3 + $0x1], 0 }
   0x4   :  { %15 = vsyncpa [#allocation5], 0 }
   0x5   :  { %17 = vsyncpa [#allocation5 + $0x1], 0  ;;  %s1572_s21 = smov 0   ;;  %s1574_s22 = smov 0  }
   0x6   :  { %s1576_s23 = smov 0   ;;  %s1578_s24 = smov 0  }
   0x7 LB: > { %s1593_s25 = sadd.s32 4294967295, %s1533_s24   ;;  %s1240_s26 = sadd.s32 4294967294, %s1533_s24   ;;  %s1533_s24 = sphi %s1578_s24, %s1931_s24   ;;  %s1529_s23 = sphi %s1576_s23, %s1930_s23   ;;  %s1525_s22 = sphi %s1574_s22, %s1929_s22   ;;  %s1521_s21 = sphi %s1572_s21, %s1928_s21  }
   0x8   : > { %s1597_s27 = sadd.s32 1, %s1533_s24   ;;  %s103_s28 = sadd.s32 1, %s1529_s23 }
   0x9   : > { %s100_s29 = ssub.s32 %s1533_s24, %s1597_s27  ;;  %p113_p0 = scmp.ne.s32.totalorder %s1529_s23, %s1525_s22 }
   0xa   : > { %p101_p1 = scmp.eq.s32.totalorder %s100_s29, 0  ;;  %p114_p2 = scmp.eq.s32.totalorder %s1593_s25, 3 }
   0xb   : > { %p119_p3 = scmp.ne.s32.totalorder %s1525_s22, %s1521_s21  ;;  %p120_p4 = scmp.eq.s32.totalorder %s1240_s26, 3 }
   0xc   : > { %s1608_s30 = scalar_select %p101_p1, %s1529_s23, %s103_s28  }
   0xd   : > { %p1610_p5 = por %p114_p2, %p113_p0  ;;  %p1614_p6 = por %p120_p4, %p119_p3 }
   0xe   : > { %p1243_p7 = scmp.ge.s32.totalorder %s1533_s24, 1  ;;  %p239_p8 = scmp.lt.s32.totalorder %s1533_s24, 5 }
  0x10   : > { %p240_p9 = pnand %p1243_p7, %p239_p8 }
  0x11   : > { %s1246_s13 = sshll.u32 (!%p240_p9), %s1593_s25, 1  ;;  %s1927_s0 = sld [smem:[#allocation8_spill]] (!%p240_p9) }
  0x12   : > { %243 = sbr.rel (%p240_p9) target bundleno = 863 (0x35f), region = 32  ;;  %p294_p10 = scmp.lt.s32.totalorder (!%p240_p9), %s1246_s13, 7 }
  0x13   : > { %s1459_s28 = scalar_lea.hbm (!%p240_p9), %s1920_s3, 64 }
  0x17   : > { %v334_v0 = vld [vmem:[%s1919_s2 + $0x18] sm:$0xff]  ;;  %v333_v1 = vld [vmem:[%s1919_s2 + $0x10] sm:$0xff]  ;;  %v332_v2 = vld [vmem:[%s1919_s2 + $0x8] sm:$0xff]  ;;  %s1933_s13 = smov (!%p294_p10, %s1246_s13), 7  ;;  %vm335_vm0 = vcmask 261120   ;;  %vm423_vm1 = vcmask 64512  }
  0x18   : > { %1372 = vmatpush.msra.mxu3 %v334_v0  ;;  %360 = vmatpush.msra.mxu0 %v334_v0  ;;  %v331_v3 = vld [vmem:[%s1919_s2] sm:$0xff]  ;;  %s1633_s18 = sshll.u32 %s1933_s13, 4  ;;  %vm464_vm2 = vcmask 130048   ;;  %s1758_s13 = sand.u32 1, %s1525_s22  }
  0x19   : > { %s298_s26 = scalar_lea.vmem %s1927_s0, %s1633_s18  ;;  %s321_s9 = scalar_lea.vmem %s1923_s6, %s1633_s18 }
  0x1a   : > { %1373 = vmatpush.msra.mxu3 %v333_v1  ;;  %361 = vmatpush.msra.mxu0 %v333_v1  ;;  %v324_v4 = vld [vmem:[%s298_s26 + $0x8] sm:$0xff]  ;;  %v323_v5 = vld [vmem:[%s298_s26] sm:$0xff]  ;;  %v326_v6 = vld [vmem:[%s298_s26 + $0x18] sm:$0xff]  ;;  %s1697_s12 = scalar_lea.vmem %s1918_s1, %s1633_s18  ;;  %s1244_s14 = sshll.u32 %s1758_s13, 4 }
  0x1b   : > { %1378 = vmatpush.msra.mxu2 %v326_v6  ;;  %527 = vmatpush.msra.mxu1 %v324_v4  ;;  %v325_v7 = vld [vmem:[%s298_s26 + $0x10] sm:$0xff]  ;;  %v330_v56 = vld [vmem:[%s1697_s12 + $0x18] sm:$0xff]  ;;  %v328_v62 = vld [vmem:[%s1697_s12 + $0x8] sm:$0xff]  ;;  %s1769_s15 = scalar_lea.vmem [#allocation2], %s1244_s14  ;;  %s314_s19 = scalar_lea.vmem %s1922_s5, %s1633_s18 }
  0x1c   : > { %1374 = vmatpush.msra.mxu3 %v332_v2  ;;  %362 = vmatpush.msra.mxu0 %v332_v2  ;;  %v329_v59 = vld [vmem:[%s1697_s12 + $0x10] sm:$0xff]  ;;  %s1855_s18 = scalar_lea.vmem [#allocation4], %s1244_s14  ;;  %s1053_s20 = sshll.u32 %s1769_s15, 4  ;;  %s1054_s20 = int_to_ptr.vmem [resolvable:$true] %s1053_s20 }
  0x1d   : > { %1379 = vmatpush.msra.mxu2 %v325_v7  ;;  %528 = vmatpush.msra.mxu1 %v323_v5  ;;  %s1370_s26 = sshll.u32 %s1593_s25, 4  ;;  %s1024_s16 = scalar_lea.sflag [#allocation3], %s1758_s13 }
  0x1e   : > { %1375 = vmatpush.msra.mxu3 %v331_v3  ;;  %363 = vmatpush.msra.mxu0 %v331_v3 }
  0x1f   : > { %1259 = vmatmul.msk.f32.vlgmr.msra.gmra.mxu3 %vm335_vm0, %v324_v4  ;;  %1258 = vmatmul.msk.f32.vlgmr.msra.gmra.mxu0 %vm335_vm0, %v323_v5 }
  0x20   : > { %657 = vmatpush.msrb.mxu0 %v326_v6  ;;  %1376 = vmatpush.msrb.mxu3 %v324_v4 }
  0x22   : > { %658 = vmatpush.msrb.mxu0 %v325_v7  ;;  %1377 = vmatpush.msrb.mxu3 %v323_v5  ;;  %v327_v5 = vld [vmem:[%s1697_s12] sm:$0xff]  ;;  %s1069_s12 = scalar_lea.hbm %s1921_s4, %s1370_s26 }
  0x24   : > { %772 = vmatpush.msra.mxu0 %v330_v56  ;;  %707 = vmatpush.msra.mxu3 %v328_v62 }
  0x26   : > { %773 = vmatpush.msra.mxu0 %v329_v59  ;;  %708 = vmatpush.msra.mxu3 %v327_v5 }
  0x27   : > { %1260 = vmatmul.msk.f32.gmra.mxu3 %vm335_vm0, %v325_v7 }
  0x2f   : > { %1261 = vmatmul.msk.f32.gmra.mxu3 %vm335_vm0, %v326_v6 }
  0x9c   : > { %v365_v8 = vpop.f32.mrf.mxu0 }
  0x9d   : > { %v1643_v9 = vmax.f32 %v365_v8, 0.0 }
  0xa2   : > { %v368_v10 = vpop.f32.mrf.mxu3 }
  0xa3   : > { %v1645_v11 = vmax.f32 %v368_v10, 0.0 }
  0xa5   : > { %v401_v12 = vadd.f32 %v1645_v11, %v1643_v9 }
  0xa7   : > { %v402_v13 = vrot.slane %v401_v12, 4 }
  0xa9   : > { %v403_v14 = vadd.f32 %v402_v13, %v401_v12 }
  0xaa   : > { %v371_v15 = vpop.f32.mrf.mxu3 }
  0xab   : > { %v404_v16 = vrot.slane %v403_v14, 2  ;;  %v379_v19 = vmax.f32 %v371_v15, 0.0 }
  0xad   : > { %v405_v17 = vadd.f32 %v404_v16, %v403_v14 }
  0xaf   : > { %v406_v18 = vrot.slane %v405_v17, 1 }
  0xb1   : > { %v407_v20 = vadd.f32 %v406_v18, %v405_v17 }
  0xb2   : > { %v374_v21 = vpop.f32.mrf.mxu3 }
  0xb3   : > { %v380_v22 = vmax.f32 %v374_v21, 0.0  ;;  %v415_v23 = vadd.f32 1e-15, %v407_v20 }
  0xb5   : > { %v408_v24 = vadd.f32 %v380_v22, %v379_v19  ;;  %387 = vadd.xlane.f32.xlu2 %v380_v22  ;;  %1427 = vrcp.f32 %v415_v23 }
  0xb7   : > { %v409_v25 = vrot.slane %v408_v24, 4 }
  0xb9   : > { %v410_v26 = vadd.f32 %v409_v25, %v408_v24 }
  0xbb   : > { %v1428_v27 = vpop.eup %1427  ;;  %v411_v28 = vrot.slane %v410_v26, 2 }
  0xbc   : > { %v419_v29 = vmul.f32 %v1428_v27, %v1643_v9  ;;  %v420_v30 = vmul.f32 %v1428_v27, %v1645_v11 }
  0xbd   : > { %385 = vadd.xlane.f32.xlu2 %v379_v19  ;;  %v412_v31 = vadd.f32 %v411_v28, %v410_v26 }
  0xbe   : > { %432 = vxpose.xlu0.b32.start [1/2] (short) %v419_v29, 128  ;;  %428 = vst.msk [vmem:[%s321_s9] sm:$0xff] %vm423_vm1, %v419_v29 }
  0xbf   : > { %429 = vst.msk [vmem:[%s321_s9 + $0x8] sm:$0xff] %vm423_vm1, %v420_v30  ;;  %v413_v32 = vrot.slane %v412_v31, 1 }
  0xc1   : > { %v414_v33 = vadd.f32 %v413_v32, %v412_v31 }
  0xc3   : > { %v416_v34 = vadd.f32 1e-15, %v414_v33 }
  0xc5   : > { %1429 = vrcp.f32 %v416_v34 }
  0xc6   : > { %433 = vxpose.xlu0.b32.end [2/2] (short) %v420_v30, 128 }
  0xcb   : > { %v1430_v35 = vpop.eup %1429 }
  0xcc   : > { %v421_v36 = vmul.f32 %v1430_v35, %v379_v19  ;;  %v422_v37 = vmul.f32 %v1430_v35, %v380_v22 }
  0xce   : > { %563 = vxpose.xlu1.b32.start [1/2] (short) %v421_v36, 128  ;;  %430 = vst.msk [vmem:[%s321_s9 + $0x10] sm:$0xff] %vm423_vm1, %v421_v36 }
  0xcf   : > { %431 = vst.msk [vmem:[%s321_s9 + $0x18] sm:$0xff] %vm423_vm1, %v422_v37  ;;  %s1052_s9 = scalar_lea.hbm %s1920_s3, %s1370_s26 }
  0xd0   : > { %s1055_s14 = sshll.u32 %s1052_s9, 4  ;;  %s1056_s14 = int_to_ptr.hbm [resolvable:$true] %s1055_s14 }
  0xd1   : > { %s1453_s17 = sshra.s32 %s1056_s14, 4  ;;  %s1454_s17 = int_to_ptr.hbm [resolvable:$true] %s1453_s17 }
  0xd2   : > { %p1460_p0 = scmp.lt.s32.totalorder %s1454_s17, %s1920_s3 }
  0xd6   : > { %564 = vxpose.xlu1.b32.end [2/2] (short) %v422_v37, 128 }
 0x128   : > { %v388_v38 = vpop.xlane.xlu2 %387 }
 0x129   : > { %v392_v39 = vadd.f32 1e-15, %v388_v38 }
 0x12b   : > { %1431 = vrcp.f32 %v392_v39 }
 0x130   : > { %v386_v40 = vpop.xlane.xlu2 %385 }
 0x131   : > { %v1432_v41 = vpop.eup %1431  ;;  %v391_v42 = vadd.f32 1e-15, %v386_v40 }
 0x132   : > { %v1659_v43 = vmul.f32 %v1432_v41, %v380_v22 }
 0x133   : > { %1433 = vrcp.f32 %v391_v42 }
 0x134   : > { %983 = vmatpush.msrb.mxu2 %v1659_v43  ;;  %427 = vst.msk [vmem:[%s314_s19 + $0x18] sm:$0xff] %vm423_vm1, %v1659_v43 }
 0x139   : > { %v1434_v44 = vpop.eup %1433 }
 0x13a   : > { %v1662_v45 = vmul.f32 %v1434_v44, %v379_v19 }
 0x13c   : > { %984 = vmatpush.msrb.mxu2 %v1662_v45  ;;  %426 = vst.msk [vmem:[%s314_s19 + $0x10] sm:$0xff] %vm423_vm1, %v1662_v45 }
 0x162   : > { %v1665_v46 = vpop.trf.xlu0 }
 0x163   : > { %1262 = vmatmul.msk.f32.vlgmr.msra.gmra.mxu1 %vm464_vm2, %v1665_v46 }
 0x16a   : > { %v1669_v47 = vpop.trf.xlu0 }
 0x16b   : > { %1263 = vmatmul.msk.f32.gmra.mxu1 %vm464_vm2, %v1669_v47 }
 0x172   : > { %v1673_v48 = vpop.trf.xlu0  ;;  %v579_v49 = vpop.trf.xlu1 }
 0x173   : > { %1264 = vmatmul.msk.f32.gmra.mxu1 %vm464_vm2, %v1673_v48  ;;  %1278 = vmatmul.msk.f32.vlgmr.msrb.gmra.mxu0 %vm464_vm2, %v579_v49 }
 0x17a   : > { %v1678_v50 = vpop.trf.xlu0  ;;  %v580_v51 = vpop.trf.xlu1 }
 0x17b   : > { %1265 = vmatmul.msk.f32.gmra.mxu1 %vm464_vm2, %v1678_v50  ;;  %1279 = vmatmul.msk.f32.gmra.mxu0 %vm464_vm2, %v580_v51 }
 0x182   : > { %v1683_v52 = vpop.trf.xlu0  ;;  %v581_v53 = vpop.trf.xlu1 }
 0x183   : > { %1266 = vmatmul.msk.f32.gmra.mxu1 %vm464_vm2, %v1683_v52  ;;  %1280 = vmatmul.msk.f32.gmra.mxu0 %vm464_vm2, %v581_v53 }
 0x18a   : > { %v1688_v54 = vpop.trf.xlu0  ;;  %v582_v55 = vpop.trf.xlu1 }
 0x18b   : > { %1267 = vmatmul.msk.f32.gmra.mxu1 %vm464_vm2, %v1688_v54  ;;  %1281 = vmatmul.msk.f32.gmra.mxu0 %vm464_vm2, %v582_v55 }
 0x192   : > { %v1700_v57 = vpop.trf.xlu0  ;;  %v583_v58 = vpop.trf.xlu1 }
 0x193   : > { %1268 = vmatmul.msk.f32.gmra.mxu1 %vm464_vm2, %v1700_v57  ;;  %1282 = vmatmul.msk.f32.gmra.mxu0 %vm464_vm2, %v583_v58 }
 0x19a   : > { %v1706_v60 = vpop.trf.xlu0  ;;  %v584_v61 = vpop.trf.xlu1 }
 0x19b   : > { %1269 = vmatmul.msk.f32.gmra.mxu1 %vm464_vm2, %v1706_v60  ;;  %1283 = vmatmul.msk.f32.gmra.mxu0 %vm464_vm2, %v584_v61 }
 0x1a2   : > { %v1712_v63 = vpop.trf.xlu0  ;;  %v585_v0 = vpop.trf.xlu1 }
 0x1a3   : > { %1270 = vmatmul.msk.f32.gmra.mxu1 %vm464_vm2, %v1712_v63  ;;  %1310 = vmatmul.msk.f32.vlgmr.msra.gmra.mxu0 %vm464_vm2, %v579_v49 }
 0x1a4   : > { %1284 = vmatmul.msk.f32.vlgmr.msra.gmra.mxu2 %vm464_vm2, %v585_v0 }
 0x1a6   : > { %381 = vadd.xlane.f32.xlu1 %v1643_v9 }
 0x1a7   : > { %383 = vadd.xlane.f32.xlu0 %v1645_v11 }
 0x1aa   : > { %v1720_v1 = vpop.trf.xlu0  ;;  %v586_v2 = vpop.trf.xlu1 }
 0x1ab   : > { %1271 = vmatmul.msk.f32.gmra.mxu1 %vm464_vm2, %v1720_v1  ;;  %1311 = vmatmul.msk.f32.gmra.mxu0 %vm464_vm2, %v580_v51 }
 0x1ac   : > { %1285 = vmatmul.msk.f32.gmra.mxu2 %vm464_vm2, %v586_v2 }
 0x1b2   : > { %v1726_v3 = vpop.trf.xlu0  ;;  %v587_v4 = vpop.trf.xlu1 }
 0x1b3   : > { %1272 = vmatmul.msk.f32.vlgmr.msrb.gmra.mxu3 %vm464_vm2, %v1726_v3  ;;  %1312 = vmatmul.msk.f32.gmra.mxu0 %vm464_vm2, %v581_v53 }
 0x1b4   : > { %1286 = vmatmul.msk.f32.gmra.mxu2 %vm464_vm2, %v587_v4 }
 0x1ba   : > { %v1733_v6 = vpop.trf.xlu0  ;;  %v588_v7 = vpop.trf.xlu1 }
 0x1bb   : > { %1273 = vmatmul.msk.f32.gmra.mxu3 %vm464_vm2, %v1733_v6  ;;  %1313 = vmatmul.msk.f32.gmra.mxu0 %vm464_vm2, %v582_v55 }
 0x1bc   : > { %1287 = vmatmul.msk.f32.gmra.mxu2 %vm464_vm2, %v588_v7 }
 0x1c2   : > { %v1739_v8 = vpop.trf.xlu0  ;;  %v589_v10 = vpop.trf.xlu1 }
 0x1c3   : > { %1274 = vmatmul.msk.f32.gmra.mxu3 %vm464_vm2, %v1739_v8  ;;  %1314 = vmatmul.msk.f32.gmra.mxu0 %vm464_vm2, %v583_v58 }
 0x1c4   : > { %1288 = vmatmul.msk.f32.gmra.mxu2 %vm464_vm2, %v589_v10 }
 0x1ca   : > { %v1745_v12 = vpop.trf.xlu0  ;;  %v590_v13 = vpop.trf.xlu1 }
 0x1cb   : > { %1275 = vmatmul.msk.f32.gmra.mxu3 %vm464_vm2, %v1745_v12  ;;  %1315 = vmatmul.msk.f32.gmra.mxu0 %vm464_vm2, %v584_v61 }
 0x1cc   : > { %1289 = vmatmul.msk.f32.gmra.mxu2 %vm464_vm2, %v590_v13 }
 0x1d2   : > { %v1751_v14 = vpop.trf.xlu0  ;;  %v591_v15 = vpop.trf.xlu1 }
 0x1d3   : > { %1276 = vmatmul.msk.f32.gmra.mxu3 %vm464_vm2, %v1751_v14  ;;  %1316 = vmatmul.msk.f32.gmra.mxu0 %vm464_vm2, %v585_v0 }
 0x1d4   : > { %1290 = vmatmul.msk.f32.gmra.mxu2 %vm464_vm2, %v591_v15 }
 0x1da   : > { %v1760_v16 = vpop.trf.xlu0  ;;  %v592_v17 = vpop.trf.xlu1 }
 0x1db   : > { %1277 = vmatmul.msk.f32.gmra.mxu3 %vm464_vm2, %v1760_v16  ;;  %1317 = vmatmul.msk.f32.gmra.mxu0 %vm464_vm2, %v586_v2 }
 0x1dc   : > { %1291 = vmatmul.msk.f32.gmra.mxu2 %vm464_vm2, %v592_v17 }
 0x1e0   : > { %v530_v18 = vpop.f32.mrf.mxu1 }
 0x1e1   : > { %1019 = vst.msk [vmem:[%s1769_s15] sm:$0xff] %vm335_vm0, %v530_v18 }
 0x1e2   : > { %v593_v19 = vpop.trf.xlu1 }
 0x1e3   : > { %1294 = vmatmul.msk.f32.vlgmr.msra.gmra.mxu3 %vm464_vm2, %v1665_v46  ;;  %1318 = vmatmul.msk.f32.gmra.mxu0 %vm464_vm2, %v587_v4 }
 0x1e4   : > { %1292 = vmatmul.msk.f32.gmra.mxu2 %vm464_vm2, %v593_v19 }
 0x1e8   : > { %v533_v20 = vpop.f32.mrf.mxu1 }
 0x1ea   : > { %v594_v21 = vpop.trf.xlu1 }
 0x1eb   : > { %1295 = vmatmul.msk.f32.gmra.mxu3 %vm464_vm2, %v1669_v47  ;;  %1319 = vmatmul.msk.f32.gmra.mxu0 %vm464_vm2, %v588_v7 }
 0x1ec   : > { %1293 = vmatmul.msk.f32.gmra.mxu2 %vm464_vm2, %v594_v21 }
 0x1f0   : > { %v535_v22 = vpop.f32.mrf.mxu1  ;;  %v660_v23 = vpop.f32.mrf.mxu0 }
 0x1f1   : > { %1020 = vst.msk [vmem:[%s1769_s15 + $0x8] sm:$0xff] %vm335_vm0, %v660_v23  ;;  %s1455_s15 = scalar_lea.hbm %s1454_s17, 16 }
 0x1f2   : > { %p1456_p11 = scmp.ne.s32.totalorder %s1454_s17, %s1455_s15  ;;  %p1461_p1 = scmp.lt.s32.totalorder %s1459_s28, %s1455_s15 }
 0x1f3   : > { %1296 = vmatmul.msk.f32.gmra.mxu3 %vm464_vm2, %v1673_v48  ;;  %1320 = vmatmul.msk.f32.gmra.mxu0 %vm464_vm2, %v589_v10 }
 0x1f4   : > { %p1457_p12 = pnand %p1456_p11, %p1610_p5  ;;  %p1462_p2 = por %p1461_p1, %p1460_p0 }
 0x1f6   : > { %p1458_p13 = pneg %p1457_p12 }
 0x1f8   : > { %v537_v24 = vpop.f32.mrf.mxu1  ;;  %v663_v25 = vpop.f32.mrf.mxu0  ;;  %p1463_p3 = pnand %p1462_p2, %p1458_p13 }
 0x1fb   : > { %1297 = vmatmul.msk.f32.gmra.mxu3 %vm464_vm2, %v1678_v50  ;;  %1321 = vmatmul.msk.f32.gmra.mxu0 %vm464_vm2, %v590_v13 }
 0x200   : > { %v539_v26 = vpop.f32.mrf.mxu1  ;;  %v665_v27 = vpop.f32.mrf.mxu0 }
 0x203   : > { %1298 = vmatmul.msk.f32.gmra.mxu3 %vm464_vm2, %v1683_v52  ;;  %1322 = vmatmul.msk.f32.gmra.mxu0 %vm464_vm2, %v591_v15 }
 0x208   : > { %v541_v28 = vpop.f32.mrf.mxu1  ;;  %v667_v29 = vpop.f32.mrf.mxu0 }
 0x20b   : > { %1299 = vmatmul.msk.f32.gmra.mxu3 %vm464_vm2, %v1688_v54  ;;  %1323 = vmatmul.msk.f32.gmra.mxu0 %vm464_vm2, %v592_v17 }
 0x210   : > { %v543_v30 = vpop.f32.mrf.mxu1  ;;  %v669_v31 = vpop.f32.mrf.mxu0 }
 0x213   : > { %1300 = vmatmul.msk.f32.gmra.mxu3 %vm464_vm2, %v1700_v57  ;;  %1324 = vmatmul.msk.f32.gmra.mxu0 %vm464_vm2, %v593_v19 }
 0x218   : > { %v545_v32 = vpop.f32.mrf.mxu1  ;;  %v671_v33 = vpop.f32.mrf.mxu0 }
 0x219   : > { %v382_v34 = vpop.xlane.xlu1 %381 }
 0x21a   : > { %v389_v35 = vadd.f32 1e-15, %v382_v34  ;;  %v384_v36 = vpop.xlane.xlu0 %383 }
 0x21b   : > { %v390_v37 = vadd.f32 1e-15, %v384_v36  ;;  %1301 = vmatmul.msk.f32.gmra.mxu3 %vm464_vm2, %v1706_v60  ;;  %1325 = vmatmul.msk.f32.gmra.mxu0 %vm464_vm2, %v594_v21 }
 0x21c   : > { %1435 = vrcp.f32 %v389_v35 }
 0x21d   : > { %1437 = vrcp.f32 %v390_v37 }
 0x220   : > { %v547_v38 = vpop.f32.mrf.mxu1  ;;  %v775_v39 = vpop.f32.mrf.mxu0 }
 0x221   : > { %1342 = vmatmul.msk.f32.vlgmr.msrb.gmra.mxu2 %vm464_vm2, %v775_v39 }
 0x222   : > { %v1436_v40 = vpop.eup %1435 }
 0x223   : > { %v1438_v41 = vpop.eup %1437  ;;  %1302 = vmatmul.msk.f32.gmra.mxu3 %vm464_vm2, %v1712_v63  ;;  %v397_v42 = vmul.f32 %v1436_v40, %v1643_v9 }
 0x224   : > { %v398_v44 = vmul.f32 %v1438_v41, %v1645_v11 }
 0x225   : > { %424 = vst.msk [vmem:[%s314_s19] sm:$0xff] %vm423_vm1, %v397_v42 }
 0x226   : > { %425 = vst.msk [vmem:[%s314_s19 + $0x8] sm:$0xff] %vm423_vm1, %v398_v44  ;;  %885 = vmatpush.msrb.mxu1 %v398_v44 }
 0x227   : > { %v673_v46 = vpop.f32.mrf.mxu2 }
 0x228   : > { %886 = vmatpush.msrb.mxu1 %v397_v42  ;;  %v549_v47 = vpop.f32.mrf.mxu1  ;;  %v778_v48 = vpop.f32.mrf.mxu0 }
 0x229   : > { %1343 = vmatmul.msk.f32.gmra.mxu2 %vm464_vm2, %v778_v48 }
 0x22b   : > { %1303 = vmatmul.msk.f32.gmra.mxu3 %vm464_vm2, %v1720_v1 }
 0x22f   : > { %v675_v9 = vpop.f32.mrf.mxu2 }
 0x230   : > { %v781_v11 = vpop.f32.mrf.mxu0 }
 0x231   : > { %1344 = vmatmul.msk.f32.gmra.mxu2 %vm464_vm2, %v781_v11 }
 0x233   : > { %1304 = vmatmul.msk.f32.gmra.mxu3 %vm464_vm2, %v1726_v3 }
 0x236   : > { %v551_v43 = vpop.f32.mrf.mxu3 }
 0x237   : > { %v677_v49 = vpop.f32.mrf.mxu2 }
 0x238   : > { %v784_v50 = vpop.f32.mrf.mxu0 }
 0x239   : > { %1345 = vmatmul.msk.f32.gmra.mxu2 %vm464_vm2, %v784_v50 }
 0x23b   : > { %1305 = vmatmul.msk.f32.gmra.mxu3 %vm464_vm2, %v1733_v6 }
 0x23e   : > { %v553_v45 = vpop.f32.mrf.mxu3 }
 0x23f   : > { %v679_v51 = vpop.f32.mrf.mxu2 }
 0x240   : > { %v787_v52 = vpop.f32.mrf.mxu0 }
 0x241   : > { %1346 = vmatmul.msk.f32.gmra.mxu2 %vm464_vm2, %v787_v52 }
 0x243   : > { %1306 = vmatmul.msk.f32.gmra.mxu3 %vm464_vm2, %v1739_v8 }
 0x246   : > { %v555_v53 = vpop.f32.mrf.mxu3 }
 0x247   : > { %v681_v54 = vpop.f32.mrf.mxu2 }
 0x248   : > { %v790_v55 = vpop.f32.mrf.mxu0 }
 0x249   : > { %1347 = vmatmul.msk.f32.gmra.mxu2 %vm464_vm2, %v790_v55 }
 0x24b   : > { %1307 = vmatmul.msk.f32.gmra.mxu3 %vm464_vm2, %v1745_v12 }
 0x24e   : > { %v557_v56 = vpop.f32.mrf.mxu3 }
 0x24f   : > { %v683_v57 = vpop.f32.mrf.mxu2 }
 0x250   : > { %v793_v58 = vpop.f32.mrf.mxu0 }
 0x251   : > { %1348 = vmatmul.msk.f32.gmra.mxu2 %vm464_vm2, %v793_v58 }
 0x253   : > { %1308 = vmatmul.msk.f32.gmra.mxu3 %vm464_vm2, %v1751_v14 }
 0x256   : > { %v559_v59 = vpop.f32.mrf.mxu3 }
 0x257   : > { %v685_v60 = vpop.f32.mrf.mxu2 }
 0x258   : > { %v796_v61 = vpop.f32.mrf.mxu0 }
 0x259   : > { %1349 = vmatmul.msk.f32.gmra.mxu2 %vm464_vm2, %v796_v61 }
 0x25b   : > { %1309 = vmatmul.msk.f32.gmra.mxu3 %vm464_vm2, %v1760_v16 }
 0x25e   : > { %v561_v62 = vpop.f32.mrf.mxu3 }
 0x25f   : > { %v687_v63 = vpop.f32.mrf.mxu2 }
 0x260   : > { %v799_v0 = vpop.f32.mrf.mxu0 }
 0x261   : > { %1350 = vmatmul.msk.f32.gmra.mxu2 %vm464_vm2, %v799_v0 }
 0x266   : > { %v710_v1 = vpop.f32.mrf.mxu3 }
 0x267   : > { %1326 = vmatmul.msk.f32.vlgmr.msrb.gmra.mxu1 %vm464_vm2, %v710_v1  ;;  %v689_v2 = vpop.f32.mrf.mxu2 }
 0x268   : > { %v802_v3 = vpop.f32.mrf.mxu0 }
 0x269   : > { %1351 = vmatmul.msk.f32.gmra.mxu2 %vm464_vm2, %v802_v3 }
 0x26e   : > { %v713_v4 = vpop.f32.mrf.mxu3 }
 0x26f   : > { %1327 = vmatmul.msk.f32.gmra.mxu1 %vm464_vm2, %v713_v4  ;;  %v691_v5 = vpop.f32.mrf.mxu2 }
 0x270   : > { %v805_v6 = vpop.f32.mrf.mxu0 }
 0x271   : > { %1352 = vmatmul.msk.f32.gmra.mxu2 %vm464_vm2, %v805_v6 }
 0x276   : > { %v716_v7 = vpop.f32.mrf.mxu3 }
 0x277   : > { %1328 = vmatmul.msk.f32.gmra.mxu1 %vm464_vm2, %v716_v7 }
 0x278   : > { %v808_v8 = vpop.f32.mrf.mxu0 }
 0x279   : > { %1353 = vmatmul.msk.f32.gmra.mxu2 %vm464_vm2, %v808_v8 }
 0x27e   : > { %v719_v10 = vpop.f32.mrf.mxu3 }
 0x27f   : > { %1329 = vmatmul.msk.f32.gmra.mxu1 %vm464_vm2, %v719_v10 }
 0x280   : > { %v811_v12 = vpop.f32.mrf.mxu0 }
 0x281   : > { %1354 = vmatmul.msk.f32.gmra.mxu2 %vm464_vm2, %v811_v12 }
 0x286   : > { %v722_v13 = vpop.f32.mrf.mxu3 }
 0x287   : > { %1330 = vmatmul.msk.f32.gmra.mxu1 %vm464_vm2, %v722_v13 }
 0x288   : > { %v814_v14 = vpop.f32.mrf.mxu0 }
 0x289   : > { %1355 = vmatmul.msk.f32.gmra.mxu2 %vm464_vm2, %v814_v14 }
 0x28e   : > { %v725_v15 = vpop.f32.mrf.mxu3 }
 0x28f   : > { %1331 = vmatmul.msk.f32.gmra.mxu1 %vm464_vm2, %v725_v15 }
 0x290   : > { %v817_v16 = vpop.f32.mrf.mxu0 }
 0x291   : > { %1356 = vmatmul.msk.f32.gmra.mxu2 %vm464_vm2, %v817_v16 }
 0x296   : > { %v728_v17 = vpop.f32.mrf.mxu3 }
 0x297   : > { %1332 = vmatmul.msk.f32.gmra.mxu1 %vm464_vm2, %v728_v17 }
 0x298   : > { %v820_v18 = vpop.f32.mrf.mxu0 }
 0x299   : > { %1357 = vmatmul.msk.f32.gmra.mxu2 %vm464_vm2, %v820_v18 }
 0x29e   : > { %v731_v19 = vpop.f32.mrf.mxu3 }
 0x29f   : > { %1333 = vmatmul.msk.f32.gmra.mxu1 %vm464_vm2, %v731_v19 }
 0x2a4   : > { %v986_v20 = vpop.f32.mrf.mxu2 }
 0x2a5   : > { %1022 = vst.msk [vmem:[%s1855_s18 + $0x8] sm:$0xff] %vm423_vm1, %v986_v20 }
 0x2a6   : > { %v734_v21 = vpop.f32.mrf.mxu3 }
 0x2a7   : > { %1334 = vmatmul.msk.f32.gmra.mxu1 %vm464_vm2, %v734_v21 }
 0x2ac   : > { %v989_v22 = vpop.f32.mrf.mxu2 }
 0x2ae   : > { %v737_v23 = vpop.f32.mrf.mxu3 }
 0x2af   : > { %1335 = vmatmul.msk.f32.gmra.mxu1 %vm464_vm2, %v737_v23 }
 0x2b4   : > { %v991_v24 = vpop.f32.mrf.mxu2 }
 0x2b6   : > { %v740_v25 = vpop.f32.mrf.mxu3 }
 0x2b7   : > { %1336 = vmatmul.msk.f32.gmra.mxu1 %vm464_vm2, %v740_v25 }
 0x2bc   : > { %v993_v26 = vpop.f32.mrf.mxu2 }
 0x2be   : > { %v743_v27 = vpop.f32.mrf.mxu3 }
 0x2bf   : > { %1337 = vmatmul.msk.f32.gmra.mxu1 %vm464_vm2, %v743_v27 }
 0x2c4   : > { %v995_v28 = vpop.f32.mrf.mxu2 }
 0x2c6   : > { %v746_v29 = vpop.f32.mrf.mxu3 }
 0x2c7   : > { %1338 = vmatmul.msk.f32.gmra.mxu1 %vm464_vm2, %v746_v29 }
 0x2cc   : > { %v997_v30 = vpop.f32.mrf.mxu2 }
 0x2ce   : > { %v749_v31 = vpop.f32.mrf.mxu3 }
 0x2cf   : > { %1339 = vmatmul.msk.f32.gmra.mxu1 %vm464_vm2, %v749_v31 }
 0x2d4   : > { %v999_v32 = vpop.f32.mrf.mxu2 }
 0x2d6   : > { %v752_v33 = vpop.f32.mrf.mxu3 }
 0x2d7   : > { %1340 = vmatmul.msk.f32.gmra.mxu1 %vm464_vm2, %v752_v33 }
 0x2dc   : > { %v1001_v34 = vpop.f32.mrf.mxu2 }
 0x2de   : > { %v755_v35 = vpop.f32.mrf.mxu3 }
 0x2df   : > { %1466 = shalt.err (!%p1463_p3)
}
 0x2e0   : > { %s1535_s26 = smov 128   ;;  %s1536_s9 = smov 8   ;;  %1341 = vmatmul.msk.f32.gmra.mxu1 %vm464_vm2, %v755_v35 }
 0x2e1   : > { %1380 = dma.vmem_to_hbm [thread:$0]  (%p1610_p5), %s1054_s20, 256, %s1056_s14, %s1024_s16, %s1535_s26, %s1535_s26, %s1536_s9  }
 0x2e2   : > { %s1070_s10 = sshll.u32 %s1855_s18, 4  ;;  %s1072_s11 = sshll.u32 %s1069_s12, 4  ;;  %s1071_s10 = int_to_ptr.vmem [resolvable:$true] %s1070_s10  ;;  %s1073_s11 = int_to_ptr.hbm [resolvable:$true] %s1072_s11 }
 0x2e3   : > { %s1029_s0 = scalar_lea.sflag [#allocation5], %s1758_s13  ;;  %s1481_s17 = sshra.s32 %s1073_s11, 4  ;;  %s1482_s17 = int_to_ptr.hbm [resolvable:$true] %s1481_s17 }
 0x2e4   : > { %v888_v36 = vpop.f32.mrf.mxu1  ;;  %v1003_v37 = vpop.f32.mrf.mxu2  ;;  %s1483_s15 = scalar_lea.hbm %s1482_s17, 16  ;;  %s1487_s14 = scalar_lea.hbm %s1921_s4, 64 }
 0x2e5   : > { %1021 = vst.msk [vmem:[%s1855_s18] sm:$0xff] %vm423_vm1, %v888_v36  ;;  %p1484_p4 = scmp.ne.s32.totalorder %s1482_s17, %s1483_s15  ;;  %p1488_p9 = scmp.lt.s32.totalorder %s1482_s17, %s1921_s4 }
 0x2e6   : > { %p1489_p10 = scmp.lt.s32.totalorder %s1487_s14, %s1483_s15 }
 0x2e7   : > { %p1485_p7 = pnand %p1484_p4, %p1610_p5 }
 0x2e8   : > { %p1490_p11 = por %p1489_p10, %p1488_p9 }
 0x2e9   : > { %p1486_p8 = pneg %p1485_p7 }
 0x2eb   : > { %p1491_p12 = pnand %p1490_p11, %p1486_p8 }
 0x2ed   : > { %1494 = shalt.err (!%p1491_p12)
}
 0x2ee   : > { %1381 = dma.vmem_to_hbm [thread:$0]  (%p1610_p5), %s1071_s10, 256, %s1073_s11, %s1029_s0, %s1535_s26, %s1535_s26, %s1536_s9   ;;  %v891_v38 = vpop.f32.mrf.mxu1  ;;  %v1005_v39 = vpop.f32.mrf.mxu2 }
 0x2f6   : > { %v893_v40 = vpop.f32.mrf.mxu1  ;;  %v1007_v41 = vpop.f32.mrf.mxu2 }
 0x2fe   : > { %v895_v42 = vpop.f32.mrf.mxu1  ;;  %v1009_v44 = vpop.f32.mrf.mxu2 }
 0x306   : > { %v897_v46 = vpop.f32.mrf.mxu1  ;;  %v1011_v47 = vpop.f32.mrf.mxu2 }
 0x30e   : > { %v899_v48 = vpop.f32.mrf.mxu1  ;;  %v1013_v9 = vpop.f32.mrf.mxu2 }
 0x316   : > { %v901_v11 = vpop.f32.mrf.mxu1  ;;  %v1015_v43 = vpop.f32.mrf.mxu2 }
 0x31e   : > { %v903_v49 = vpop.f32.mrf.mxu1  ;;  %v1017_v50 = vpop.f32.mrf.mxu2 }
 0x326   : > { %v905_v45 = vpop.f32.mrf.mxu1 }
 0x32e   : > { %v907_v51 = vpop.f32.mrf.mxu1 }
 0x336   : > { %v909_v52 = vpop.f32.mrf.mxu1 }
 0x33e   : > { %v911_v53 = vpop.f32.mrf.mxu1 }
 0x346   : > { %v913_v54 = vpop.f32.mrf.mxu1 }
 0x34e   : > { %v915_v55 = vpop.f32.mrf.mxu1 }
 0x356   : > { %v917_v56 = vpop.f32.mrf.mxu1 }
 0x35e   : > { %v919_v57 = vpop.f32.mrf.mxu1 }
 0x35f PF: > { %p1391_p5 = scmp.ge.s32.totalorder %s1533_s24, 2  ;;  %s1095_s7 = sand.u32 1, %s1521_s21  }
 0x360   : > { %s1096_s13 = scalar_lea.sflag [#allocation3], %s1095_s7 }
 0x361   : > { %p1385_p13 = pnand %p1391_p5, %p1614_p6 }
 0x363   : > { %p1386_p0 = pneg %p1385_p13 }
 0x365   : > { %1512 = dma.done.wait (%p1386_p0), %s1096_s13, 256  }
 0x366   : > { %1514 = vsyncadd (%p1386_p0), %s1096_s13, 4294967040  ;;  %s1106_s18 = scalar_lea.sflag [#allocation5], %s1095_s7 }
 0x367   : > { %1516 = dma.done.wait (%p1386_p0), %s1106_s18, 256  }
 0x368   : > { %1518 = vsyncadd (%p1386_p0), %s1106_s18, 4294967040  ;;  %p20_p1 = scmp.ge.s32.totalorder %s1597_s27, 6   ;;  %s1928_s21 = smov %s1525_s22 }
 0x369   : > { %s1929_s22 = smov %s1529_s23  ;;  %s1930_s23 = smov %s1608_s30 }
 0x36a   : > { %s1931_s24 = smov %s1597_s27  ;;  %22 = sbr.rel (!%p20_p1) target bundleno = 7 (0x7), region = 111 }
 0x36f   :  { %1130 = vsyncpa [#allocation3], 1 }
 0x370   :  { %1132 = vsyncpa [#allocation3 + $0x1], 1 }
 0x371   :  { %1133 = vsyncpa [#allocation5], 1 }
 0x372   :  { %1135 = vsyncpa [#allocation5 + $0x1], 1 }

</bundles_post_ra>
